<compile_context>
chip_gen: v5e
topology: v5e:2x2
jax: 0.10.0
libtpu: 0.0.40
codegen_flags: <defaults>
</compile_context>

<pallas_src>
import functools

import jax
import jax.numpy as jnp
import numpy as np
from jax import lax
from jax.experimental import pallas as pl
from jax.experimental.pallas import tpu as pltpu


# ----------------------------------------------------------------------------
# Pallas kernel: one (batch, object-tile) pair per grid step; views unrolled.
# ----------------------------------------------------------------------------
def _proj_kernel(cam_ref,      # SMEM (B*V*16,)  per (b,v): [M(9), c(3), W, H, 0, 0]
                 verts_ref,    # (1, 3, Ot, Nv)  template vertices (planar xyz)
                 scale_ref,    # (1, 3, Ot, 1)   sizes / 2
                 center_ref,   # (1, 3, Ot, 1)   box centers
                 p2d_ref,      # (1, V, 2, Ot, Nv)  clamped (u, v)
                 infr_ref,     # (1, V, 1, Ot, 1)   per-object in-frustum flag
                 p3d_ref,      # (1, 3, Ot, Nv)     posed vertices (world space)
                 *, n_views, true_nv):
    b = pl.program_id(0)

    # move_meshes_to_box3ds: v * (size/2) + center  -- computed ONCE per object.
    posed = verts_ref[0] * scale_ref[0] + center_ref[0]      # (3, Ot, Nv)
    p3d_ref[0] = posed

    px = posed[0]                                            # (Ot, Nv)
    py = posed[1]
    pz = posed[2]

    nv = px.shape[-1]
    valid = None
    if true_nv < nv:
        # padded vertex lanes project to the box center; keep them out of the
        # frustum reduction.
        valid = lax.broadcasted_iota(jnp.int32, (1, nv), 1) < true_nv

    for v in range(n_views):                                 # static unroll
        base = (b * n_views + v) * 16
        m00 = cam_ref[base + 0]; m01 = cam_ref[base + 1]; m02 = cam_ref[base + 2]
        m10 = cam_ref[base + 3]; m11 = cam_ref[base + 4]; m12 = cam_ref[base + 5]
        m20 = cam_ref[base + 6]; m21 = cam_ref[base + 7]; m22 = cam_ref[base + 8]
        c0 = cam_ref[base + 9]; c1 = cam_ref[base + 10]; c2 = cam_ref[base + 11]
        w = cam_ref[base + 12]; h = cam_ref[base + 13]

        # pinhole projection: uvz = M @ posed + c  (scalar x plane VPU
        # mul-adds; deliberately NOT routed to the MXU).
        z = m20 * px + m21 * py + m22 * pz + c2              # (Ot, Nv)
        inv_z = 1.0 / z                                      # one divide/view
        u = (m00 * px + m01 * py + m02 * pz + c0) * inv_z
        vv = (m10 * px + m11 * py + m12 * pz + c1) * inv_z

        p2d_ref[0, v, 0] = jnp.clip(u, 0.0, w - 1.0)         # unmasked (Ot,Nv) vst
        p2d_ref[0, v, 1] = jnp.clip(vv, 0.0, h - 1.0)

        # in_frustum: any (valid) vertex with z > 0 and inside the image.
        in_fr = (z > 0.0) & (u >= 0.0) & (u < w) & (vv >= 0.0) & (vv < h)
        if valid is not None:
            in_fr = in_fr & valid
        infr_ref[0, v, 0] = jnp.max(in_fr.astype(jnp.float32),
                                    axis=-1, keepdims=True)   # (Ot, 1)


# ----------------------------------------------------------------------------
# Wrapper (parameter fusing / padding in plain JAX; no minor-dim relayouts).
# ----------------------------------------------------------------------------
@functools.partial(jax.jit, static_argnames=('true_nv', 'o_tile', 'channels_last'))
def proj2img_forward(box3ds, verts_pl, cam_Ts, cam_Ks, image_sizes,
                     true_nv=None, o_tile=8, channels_last=False):
    """Pallas implementation of Proj2Img.forward (start_deform=False path).

    Args:
      box3ds:      (B, O, >=6)   [cx, cy, cz, sx, sy, sz, classes...]
      verts_pl:    (B, 3, O, Nv) planar (coordinate-major) template vertices
                   (= torch `verts_padded()` (B*O, Nv, 3) transposed).
      cam_Ts:      (B, V, 4, 4)  camera-to-world extrinsics
      cam_Ks:      (B, V, 3, 3)  intrinsics
      image_sizes: (B, V, 2)     (W, H)
      true_nv:     number of real (non lane-pad) vertices per mesh (static).
      o_tile:      objects per grid step (static, multiple of 8).
      channels_last: if True, transpose outputs to the torch layout
                   (points_2d (B,V,O,Nv,2), points_3d (B,O,Nv,3)).

    Returns dict with points_2d, points_3d, in_frustum, classes_completeness,
    silhouettes=None, obj_ids=None (matching the torch module).  Default
    output layout is planar: points_2d (B,V,2,O,Nv), points_3d (B,3,O,Nv).
    """
    B, O = box3ds.shape[:2]
    V = cam_Ts.shape[1]
    Nv_in = verts_pl.shape[-1]

    box3ds = box3ds.astype(jnp.float32)
    centers = box3ds[..., :3]                              # (B, O, 3)
    sizes = box3ds[..., 3:6]
    classes_completeness = box3ds[..., 6:]

    # TODO(synk): pred_mask / pred_gt_matching in-place masking of centers/sizes
    # (train/demo-only branches) is skipped; default forward path implemented.

    verts_pl = verts_pl.astype(jnp.float32).reshape(B, 3, O, Nv_in)

    # Lane padding (vertex axis) to a multiple of 128.
    Nv = -(-Nv_in // 128) * 128
    if Nv != Nv_in:
        verts_pl = jnp.pad(verts_pl, ((0, 0), (0, 0), (0, 0), (0, Nv - Nv_in)))
    tn = Nv_in if true_nv is None else min(int(true_nv), Nv_in)

    scale = (jnp.transpose(sizes, (0, 2, 1)) / 2.0)[..., None]     # (B, 3, O, 1)
    center = jnp.transpose(centers, (0, 2, 1))[..., None]          # (B, 3, O, 1)

    # Sublane padding (object axis) to a multiple of the object tile.
    ot = int(o_tile)
    assert ot > 0 and ot % 8 == 0, "o_tile must be a positive multiple of 8"
    num_ot = -(-O // ot)
    O_pad = num_ot * ot
    if O_pad != O:
        po = O_pad - O
        verts_pl = jnp.pad(verts_pl, ((0, 0), (0, 0), (0, po), (0, 0)))
        scale = jnp.pad(scale, ((0, 0), (0, 0), (0, po), (0, 0)))
        center = jnp.pad(center, ((0, 0), (0, 0), (0, po), (0, 0)))

    # Fuse intrinsics/extrinsics:  uvz = K @ R^T @ (p - t) = M @ p + c.
    # Packed per (b, v) into 16 SMEM floats [m00..m22, c0..c2, W, H, pad, pad].
    cam_Ts = cam_Ts.astype(jnp.float32)
    cam_Ks = cam_Ks.astype(jnp.float32)
    R = cam_Ts[:, :, :3, :3]                               # (B, V, 3, 3)
    t = cam_Ts[:, :, :3, 3]                                # (B, V, 3)
    M = jnp.einsum('bvij,bvkj->bvik', cam_Ks, R)           # K @ R^T
    c = -jnp.einsum('bvij,bvj->bvi', M, t)                 # (B, V, 3)
    cam_flat = jnp.concatenate(
        [M.reshape(B, V, 9), c, image_sizes.astype(jnp.float32),
         jnp.zeros((B, V, 2), jnp.float32)], axis=-1).reshape(-1)   # (B*V*16,)

    grid = (B, num_ot)
    out_shapes = (
        jax.ShapeDtypeStruct((B, V, 2, O_pad, Nv), jnp.float32),    # points_2d
        jax.ShapeDtypeStruct((B, V, num_ot, ot, 1), jnp.float32),   # in_frustum
        jax.ShapeDtypeStruct((B, 3, O_pad, Nv), jnp.float32),       # points_3d
    )
    in_specs = [
        pl.BlockSpec((1, 3, ot, Nv), lambda b, o, cam: (b, 0, o, 0)),   # verts
        pl.BlockSpec((1, 3, ot, 1), lambda b, o, cam: (b, 0, o, 0)),    # scale
        pl.BlockSpec((1, 3, ot, 1), lambda b, o, cam: (b, 0, o, 0)),    # center
    ]
    out_specs = [
        pl.BlockSpec((1, V, 2, ot, Nv), lambda b, o, cam: (b, 0, 0, o, 0)),
        pl.BlockSpec((1, V, 1, ot, 1), lambda b, o, cam: (b, 0, o, 0, 0)),
        pl.BlockSpec((1, 3, ot, Nv), lambda b, o, cam: (b, 0, o, 0)),
    ]

    kernel = functools.partial(_proj_kernel, n_views=V, true_nv=tn)

    p2d, infr, p3d = pl.pallas_call(
        kernel,
        out_shape=out_shapes,
        grid_spec=pltpu.PrefetchScalarGridSpec(
            num_scalar_prefetch=1,
            grid=grid,
            in_specs=in_specs,
            out_specs=out_specs,
        ),
        compiler_params=pltpu.CompilerParams(
            dimension_semantics=("parallel", "parallel")),
    )(cam_flat, verts_pl, scale, center)

    points_2d = p2d                                        # (B, V, 2, O_pad, Nv)
    points_3d = p3d                                        # (B, 3, O_pad, Nv)
    if O_pad != O:
        points_2d = points_2d[:, :, :, :O]
        points_3d = points_3d[:, :, :O]
    if Nv != Nv_in:
        points_2d = points_2d[..., :Nv_in]
        points_3d = points_3d[..., :Nv_in]
    in_frustum = infr.reshape(B, V, O_pad)[:, :, :O] > 0.5  # (B, V, O) bool

    if channels_last:
        points_2d = jnp.transpose(points_2d, (0, 1, 3, 4, 2))   # (B,V,O,Nv,2)
        points_3d = jnp.transpose(points_3d, (0, 2, 3, 1))      # (B,O,Nv,3)

    return {
        'points_2d': points_2d,
        'points_3d': points_3d,
        'in_frustum': in_frustum,
        'classes_completeness': classes_completeness,
        'silhouettes': None,   # requires a mesh rasterizer (start_deform=True path)
        'obj_ids': None,
    }


# ----------------------------------------------------------------------------
# Pure-JAX reference (same math) for a correctness check.
# ----------------------------------------------------------------------------
def _reference(box3ds, verts_pl, cam_Ts, cam_Ks, image_sizes, true_nv):
    centers = box3ds[..., :3]
    sizes = box3ds[..., 3:6]
    verts = jnp.transpose(verts_pl, (0, 2, 3, 1))                       # (B,O,Nv,3)
    posed = verts * (sizes / 2.0)[:, :, None] + centers[:, :, None]     # (B,O,Nv,3)
    R = cam_Ts[:, :, :3, :3]
    t = cam_Ts[:, :, :3, 3]
    rel = posed[:, None] - t[:, :, None, None]                          # (B,V,O,Nv,3)
    p_cam = jnp.einsum('bvji,bvonj->bvoni', R, rel)
    uvz = jnp.einsum('bvij,bvonj->bvoni', cam_Ks, p_cam)
    z = uvz[..., 2:3]
    uv = uvz[..., :2] / z
    wh = image_sizes[:, :, None, None].astype(jnp.float32)              # (B,V,1,1,2)
    p2d = jnp.clip(uv, 0.0, wh - 1.0)
    in_fr = ((z[..., 0] > 0)
             & (uv[..., 0] >= 0) & (uv[..., 0] < wh[..., 0])
             & (uv[..., 1] >= 0) & (uv[..., 1] < wh[..., 1]))
    in_fr = jnp.any(in_fr[..., :true_nv], axis=-1)                      # (B,V,O)
    return p2d, in_fr, posed


if __name__ == "__main__":
    # small shapes (real module uses Nv=2562 padded to 2688, O up to ~dozens)
    B, V, O = 2, 2, 5
    true_nv, Nv = 200, 256           # padded vertex lanes exercised
    box_dim = 8                      # 3 center + 3 size + 2 class/completeness
    W, H = 64.0, 48.0

    key = jax.random.PRNGKey(0)
    k1, k2, k3, k4 = jax.random.split(key, 4)

    # box3ds: centers near origin, positive sizes, random class logits
    centers = jax.random.normal(k1, (B, O, 3), jnp.float32) * 0.5
    sizes = jax.random.uniform(k2, (B, O, 3), jnp.float32, 0.5, 1.5)
    classes = jax.random.normal(k3, (B, O, box_dim - 6), jnp.float32)
    box3ds = jnp.concatenate([centers, sizes, classes], axis=-1)

    # unit-sphere-ish template vertices, planar coordinate-major, zero-padded
    vr = jax.random.normal(k4, (B, 3, O, true_nv), jnp.float32)
    vr = vr / (jnp.linalg.norm(vr, axis=1, keepdims=True) + 1e-6)
    verts_pl = jnp.pad(vr, ((0, 0), (0, 0), (0, 0), (0, Nv - true_nv)))

    # camera-to-world extrinsics: small rotation about y, camera pulled back in z
    cam_Ts = np.zeros((B, V, 4, 4), np.float32)
    for b in range(B):
        for v in range(V):
            ang = 0.1 * (b * V + v)
            ca, sa = np.cos(ang), np.sin(ang)
            Rm = np.array([[ca, 0.0, sa],
                           [0.0, 1.0, 0.0],
                           [-sa, 0.0, ca]], np.float32)
            cam_Ts[b, v, :3, :3] = Rm
            cam_Ts[b, v, :3, 3] = np.array([0.1 * v, 0.05 * b, -5.0], np.float32)
            cam_Ts[b, v, 3, 3] = 1.0
    cam_Ts = jnp.asarray(cam_Ts)

    f = 100.0
    cam_Ks = jnp.broadcast_to(
        jnp.array([[f, 0.0, W / 2], [0.0, f, H / 2], [0.0, 0.0, 1.0]], jnp.float32),
        (B, V, 3, 3))
    image_sizes = jnp.broadcast_to(jnp.array([W, H], jnp.float32), (B, V, 2))

    out = proj2img_forward(box3ds, verts_pl, cam_Ts, cam_Ks, image_sizes,
                           true_nv=true_nv, o_tile=8)
    jax.block_until_ready(out['points_2d'])

    # correctness check against a pure-JAX reference
    p2d_ref, infr_ref, p3d_ref = _reference(box3ds, verts_pl, cam_Ts, cam_Ks,
                                            image_sizes, true_nv)
    assert out['points_2d'].shape == (B, V, 2, O, Nv)
    assert out['points_3d'].shape == (B, 3, O, Nv)
    assert out['in_frustum'].shape == (B, V, O)

    p3d_ref_pl = jnp.transpose(p3d_ref, (0, 3, 1, 2))        # (B, 3, O, Nv)
    p2d_ref_pl = jnp.transpose(p2d_ref, (0, 1, 4, 2, 3))     # (B, V, 2, O, Nv)
    np.testing.assert_allclose(np.asarray(out['points_3d']), np.asarray(p3d_ref_pl),
                               rtol=1e-5, atol=1e-5)
    np.testing.assert_allclose(np.asarray(out['points_2d']), np.asarray(p2d_ref_pl),
                               rtol=1e-4, atol=1e-3)
    np.testing.assert_array_equal(np.asarray(out['in_frustum']), np.asarray(infr_ref))

    print("KERNEL_OK")
</pallas_src>

<mosaic_0001>
module attributes {stable_mosaic.version = 11 : i64} {
  func.func @_proj_kernel(%arg0: i32, %arg1: i32, %arg2: memref<64xf32, #tpu.memory_space<smem>>, %arg3: memref<1x3x8x256xf32, #tpu.memory_space<vmem>>, %arg4: memref<1x3x8x1xf32, #tpu.memory_space<vmem>>, %arg5: memref<1x3x8x1xf32, #tpu.memory_space<vmem>>, %arg6: memref<1x2x2x8x256xf32, #tpu.memory_space<vmem>>, %arg7: memref<1x2x1x8x1xf32, #tpu.memory_space<vmem>>, %arg8: memref<1x3x8x256xf32, #tpu.memory_space<vmem>>) attributes {dimension_semantics = [#tpu.dimension_semantics<parallel>, #tpu.dimension_semantics<parallel>], iteration_bounds = array<i64: 2, 1>, scalar_prefetch = 1 : i64, scratch_operands = 0 : i64, tpu.core_type = #tpu.core_type<tc>, window_params = [{transform_indices = @transform_0, window_bounds = array<i64: 1, 3, 8, 256>}, {transform_indices = @transform_1, window_bounds = array<i64: 1, 3, 8, 1>}, {transform_indices = @transform_2, window_bounds = array<i64: 1, 3, 8, 1>}, {transform_indices = @transform_3, window_bounds = array<i64: 1, 2, 2, 8, 256>}, {transform_indices = @transform_4, window_bounds = array<i64: 1, 2, 1, 8, 1>}, {transform_indices = @transform_5, window_bounds = array<i64: 1, 3, 8, 256>}]} {
    %c0 = arith.constant 0 : index
    %c0_0 = arith.constant 0 : index
    %c0_1 = arith.constant 0 : index
    %c0_2 = arith.constant 0 : index
    %0 = vector.load %arg3[%c0, %c0_0, %c0_1, %c0_2] : memref<1x3x8x256xf32, #tpu.memory_space<vmem>>, vector<1x3x8x256xf32>
    %1 = vector.shape_cast %0 : vector<1x3x8x256xf32> to vector<3x8x256xf32>
    %c0_3 = arith.constant 0 : index
    %c0_4 = arith.constant 0 : index
    %c0_5 = arith.constant 0 : index
    %c0_6 = arith.constant 0 : index
    %2 = vector.load %arg4[%c0_3, %c0_4, %c0_5, %c0_6] : memref<1x3x8x1xf32, #tpu.memory_space<vmem>>, vector<1x3x8x1xf32>
    %3 = vector.shape_cast %2 : vector<1x3x8x1xf32> to vector<3x8x1xf32>
    %4 = vector.broadcast %3 : vector<3x8x1xf32> to vector<3x8x256xf32>
    %5 = arith.mulf %1, %4 : vector<3x8x256xf32>
    %c0_7 = arith.constant 0 : index
    %c0_8 = arith.constant 0 : index
    %c0_9 = arith.constant 0 : index
    %c0_10 = arith.constant 0 : index
    %6 = vector.load %arg5[%c0_7, %c0_8, %c0_9, %c0_10] : memref<1x3x8x1xf32, #tpu.memory_space<vmem>>, vector<1x3x8x1xf32>
    %7 = vector.shape_cast %6 : vector<1x3x8x1xf32> to vector<3x8x1xf32>
    %8 = vector.broadcast %7 : vector<3x8x1xf32> to vector<3x8x256xf32>
    %9 = arith.addf %5, %8 : vector<3x8x256xf32>
    %c0_11 = arith.constant 0 : index
    %c0_12 = arith.constant 0 : index
    %c0_13 = arith.constant 0 : index
    %c0_14 = arith.constant 0 : index
    %10 = vector.load %arg8[%c0_11, %c0_12, %c0_13, %c0_14] : memref<1x3x8x256xf32, #tpu.memory_space<vmem>>, vector<1x3x8x256xf32>
    %11 = vector.shape_cast %10 : vector<1x3x8x256xf32> to vector<3x8x256xf32>
    %12 = vector.shape_cast %9 : vector<3x8x256xf32> to vector<1x3x8x256xf32>
    tpu.vector_store %arg8[%c0_11, %c0_12, %c0_13, %c0_14], %12 {strides = array<i32>} : memref<1x3x8x256xf32, #tpu.memory_space<vmem>>, vector<1x3x8x256xf32>,
    %13 = vector.extract_strided_slice %9 {offsets = [0, 0, 0], sizes = [1, 8, 256], strides = [1, 1, 1]} : vector<3x8x256xf32> to vector<1x8x256xf32>
    %14 = vector.shape_cast %13 : vector<1x8x256xf32> to vector<8x256xf32>
    %15 = vector.extract_strided_slice %9 {offsets = [1, 0, 0], sizes = [1, 8, 256], strides = [1, 1, 1]} : vector<3x8x256xf32> to vector<1x8x256xf32>
    %16 = vector.shape_cast %15 : vector<1x8x256xf32> to vector<8x256xf32>
    %17 = vector.extract_strided_slice %9 {offsets = [2, 0, 0], sizes = [1, 8, 256], strides = [1, 1, 1]} : vector<3x8x256xf32> to vector<1x8x256xf32>
    %18 = vector.shape_cast %17 : vector<1x8x256xf32> to vector<8x256xf32>
    %19 = tpu.iota {dimensions = array<i32: 1>} : vector<1x256xi32>
    %c200_i32 = arith.constant 200 : i32
    %20 = vector.broadcast %c200_i32 : i32 to vector<1x256xi32>
    %21 = arith.cmpi slt, %19, %20 : vector<1x256xi32>
    %c2_i32 = arith.constant 2 : i32
    %22 = arith.muli %arg0, %c2_i32 : i32
    %c0_i32 = arith.constant 0 : i32
    %23 = arith.addi %22, %c0_i32 : i32
    %c16_i32 = arith.constant 16 : i32
    %24 = arith.muli %23, %c16_i32 : i32
    %c0_i32_15 = arith.constant 0 : i32
    %25 = arith.addi %24, %c0_i32_15 : i32
    %26 = arith.index_cast %25 : i32 to index
    %27 = memref.load %arg2[%26] : memref<64xf32, #tpu.memory_space<smem>>
    %c1_i32 = arith.constant 1 : i32
    %28 = arith.addi %24, %c1_i32 : i32
    %29 = arith.index_cast %28 : i32 to index
    %30 = memref.load %arg2[%29] : memref<64xf32, #tpu.memory_space<smem>>
    %c2_i32_16 = arith.constant 2 : i32
    %31 = arith.addi %24, %c2_i32_16 : i32
    %32 = arith.index_cast %31 : i32 to index
    %33 = memref.load %arg2[%32] : memref<64xf32, #tpu.memory_space<smem>>
    %c3_i32 = arith.constant 3 : i32
    %34 = arith.addi %24, %c3_i32 : i32
    %35 = arith.index_cast %34 : i32 to index
    %36 = memref.load %arg2[%35] : memref<64xf32, #tpu.memory_space<smem>>
    %c4_i32 = arith.constant 4 : i32
    %37 = arith.addi %24, %c4_i32 : i32
    %38 = arith.index_cast %37 : i32 to index
    %39 = memref.load %arg2[%38] : memref<64xf32, #tpu.memory_space<smem>>
    %c5_i32 = arith.constant 5 : i32
    %40 = arith.addi %24, %c5_i32 : i32
    %41 = arith.index_cast %40 : i32 to index
    %42 = memref.load %arg2[%41] : memref<64xf32, #tpu.memory_space<smem>>
    %c6_i32 = arith.constant 6 : i32
    %43 = arith.addi %24, %c6_i32 : i32
    %44 = arith.index_cast %43 : i32 to index
    %45 = memref.load %arg2[%44] : memref<64xf32, #tpu.memory_space<smem>>
    %c7_i32 = arith.constant 7 : i32
    %46 = arith.addi %24, %c7_i32 : i32
    %47 = arith.index_cast %46 : i32 to index
    %48 = memref.load %arg2[%47] : memref<64xf32, #tpu.memory_space<smem>>
    %c8_i32 = arith.constant 8 : i32
    %49 = arith.addi %24, %c8_i32 : i32
    %50 = arith.index_cast %49 : i32 to index
    %51 = memref.load %arg2[%50] : memref<64xf32, #tpu.memory_space<smem>>
    %c9_i32 = arith.constant 9 : i32
    %52 = arith.addi %24, %c9_i32 : i32
    %53 = arith.index_cast %52 : i32 to index
    %54 = memref.load %arg2[%53] : memref<64xf32, #tpu.memory_space<smem>>
    %c10_i32 = arith.constant 10 : i32
    %55 = arith.addi %24, %c10_i32 : i32
    %56 = arith.index_cast %55 : i32 to index
    %57 = memref.load %arg2[%56] : memref<64xf32, #tpu.memory_space<smem>>
    %c11_i32 = arith.constant 11 : i32
    %58 = arith.addi %24, %c11_i32 : i32
    %59 = arith.index_cast %58 : i32 to index
    %60 = memref.load %arg2[%59] : memref<64xf32, #tpu.memory_space<smem>>
    %c12_i32 = arith.constant 12 : i32
    %61 = arith.addi %24, %c12_i32 : i32
    %62 = arith.index_cast %61 : i32 to index
    %63 = memref.load %arg2[%62] : memref<64xf32, #tpu.memory_space<smem>>
    %c13_i32 = arith.constant 13 : i32
    %64 = arith.addi %24, %c13_i32 : i32
    %65 = arith.index_cast %64 : i32 to index
    %66 = memref.load %arg2[%65] : memref<64xf32, #tpu.memory_space<smem>>
    %67 = vector.broadcast %45 : f32 to vector<8x256xf32>
    %68 = arith.mulf %67, %14 : vector<8x256xf32>
    %69 = vector.broadcast %48 : f32 to vector<8x256xf32>
    %70 = arith.mulf %69, %16 : vector<8x256xf32>
    %71 = arith.addf %68, %70 : vector<8x256xf32>
    %72 = vector.broadcast %51 : f32 to vector<8x256xf32>
    %73 = arith.mulf %72, %18 : vector<8x256xf32>
    %74 = arith.addf %71, %73 : vector<8x256xf32>
    %75 = vector.broadcast %60 : f32 to vector<8x256xf32>
    %76 = arith.addf %74, %75 : vector<8x256xf32>
    %cst = arith.constant 1.000000e+00 : f32
    %77 = vector.broadcast %cst : f32 to vector<8x256xf32>
    %78 = arith.divf %77, %76 : vector<8x256xf32>
    %79 = vector.broadcast %27 : f32 to vector<8x256xf32>
    %80 = arith.mulf %79, %14 : vector<8x256xf32>
    %81 = vector.broadcast %30 : f32 to vector<8x256xf32>
    %82 = arith.mulf %81, %16 : vector<8x256xf32>
    %83 = arith.addf %80, %82 : vector<8x256xf32>
    %84 = vector.broadcast %33 : f32 to vector<8x256xf32>
    %85 = arith.mulf %84, %18 : vector<8x256xf32>
    %86 = arith.addf %83, %85 : vector<8x256xf32>
    %87 = vector.broadcast %54 : f32 to vector<8x256xf32>
    %88 = arith.addf %86, %87 : vector<8x256xf32>
    %89 = arith.mulf %88, %78 : vector<8x256xf32>
    %90 = vector.broadcast %36 : f32 to vector<8x256xf32>
    %91 = arith.mulf %90, %14 : vector<8x256xf32>
    %92 = vector.broadcast %39 : f32 to vector<8x256xf32>
    %93 = arith.mulf %92, %16 : vector<8x256xf32>
    %94 = arith.addf %91, %93 : vector<8x256xf32>
    %95 = vector.broadcast %42 : f32 to vector<8x256xf32>
    %96 = arith.mulf %95, %18 : vector<8x256xf32>
    %97 = arith.addf %94, %96 : vector<8x256xf32>
    %98 = vector.broadcast %57 : f32 to vector<8x256xf32>
    %99 = arith.addf %97, %98 : vector<8x256xf32>
    %100 = arith.mulf %99, %78 : vector<8x256xf32>
    %cst_17 = arith.constant 1.000000e+00 : f32
    %101 = arith.subf %63, %cst_17 : f32
    %cst_18 = arith.constant 0.000000e+00 : f32
    %102 = vector.broadcast %cst_18 : f32 to vector<8x256xf32>
    %103 = arith.maximumf %102, %89 : vector<8x256xf32>
    %104 = vector.broadcast %101 : f32 to vector<8x256xf32>
    %105 = arith.minimumf %104, %103 : vector<8x256xf32>
    %c0_19 = arith.constant 0 : index
    %c0_20 = arith.constant 0 : index
    %c0_21 = arith.constant 0 : index
    %c0_22 = arith.constant 0 : index
    %c0_23 = arith.constant 0 : index
    %106 = vector.load %arg6[%c0_19, %c0_20, %c0_21, %c0_22, %c0_23] : memref<1x2x2x8x256xf32, #tpu.memory_space<vmem>>, vector<1x1x1x8x256xf32>
    %107 = vector.shape_cast %106 : vector<1x1x1x8x256xf32> to vector<8x256xf32>
    %108 = vector.shape_cast %105 : vector<8x256xf32> to vector<1x1x1x8x256xf32>
    tpu.vector_store %arg6[%c0_19, %c0_20, %c0_21, %c0_22, %c0_23], %108 {strides = array<i32>} : memref<1x2x2x8x256xf32, #tpu.memory_space<vmem>>, vector<1x1x1x8x256xf32>,
    %cst_24 = arith.constant 1.000000e+00 : f32
    %109 = arith.subf %66, %cst_24 : f32
    %cst_25 = arith.constant 0.000000e+00 : f32
    %110 = vector.broadcast %cst_25 : f32 to vector<8x256xf32>
    %111 = arith.maximumf %110, %100 : vector<8x256xf32>
    %112 = vector.broadcast %109 : f32 to vector<8x256xf32>
    %113 = arith.minimumf %112, %111 : vector<8x256xf32>
    %c0_26 = arith.constant 0 : index
    %c0_27 = arith.constant 0 : index
    %c1 = arith.constant 1 : index
    %c0_28 = arith.constant 0 : index
    %c0_29 = arith.constant 0 : index
    %114 = vector.load %arg6[%c0_26, %c0_27, %c1, %c0_28, %c0_29] : memref<1x2x2x8x256xf32, #tpu.memory_space<vmem>>, vector<1x1x1x8x256xf32>
    %115 = vector.shape_cast %114 : vector<1x1x1x8x256xf32> to vector<8x256xf32>
    %116 = vector.shape_cast %113 : vector<8x256xf32> to vector<1x1x1x8x256xf32>
    tpu.vector_store %arg6[%c0_26, %c0_27, %c1, %c0_28, %c0_29], %116 {strides = array<i32>} : memref<1x2x2x8x256xf32, #tpu.memory_space<vmem>>, vector<1x1x1x8x256xf32>,
    %cst_30 = arith.constant 0.000000e+00 : f32
    %117 = vector.broadcast %cst_30 : f32 to vector<8x256xf32>
    %118 = arith.cmpf ogt, %76, %117 : vector<8x256xf32>
    %cst_31 = arith.constant 0.000000e+00 : f32
    %119 = vector.broadcast %cst_31 : f32 to vector<8x256xf32>
    %120 = arith.cmpf oge, %89, %119 : vector<8x256xf32>
    %121 = arith.andi %118, %120 : vector<8x256xi1>
    %122 = vector.broadcast %63 : f32 to vector<8x256xf32>
    %123 = arith.cmpf olt, %89, %122 : vector<8x256xf32>
    %124 = arith.andi %121, %123 : vector<8x256xi1>
    %cst_32 = arith.constant 0.000000e+00 : f32
    %125 = vector.broadcast %cst_32 : f32 to vector<8x256xf32>
    %126 = arith.cmpf oge, %100, %125 : vector<8x256xf32>
    %127 = arith.andi %124, %126 : vector<8x256xi1>
    %128 = vector.broadcast %66 : f32 to vector<8x256xf32>
    %129 = arith.cmpf olt, %100, %128 : vector<8x256xf32>
    %130 = arith.andi %127, %129 : vector<8x256xi1>
    %131 = vector.broadcast %21 : vector<1x256xi1> to vector<8x256xi1>
    %132 = arith.andi %130, %131 : vector<8x256xi1>
    %133 = arith.extui %132 : vector<8x256xi1> to vector<8x256xi32>
    %134 = arith.sitofp %133 : vector<8x256xi32> to vector<8x256xf32>
    %cst_33 = arith.constant dense<0xFF800000> : vector<8xf32>
    %135 = vector.multi_reduction <maximumf>, %134, %cst_33 [1] : vector<8x256xf32> to vector<8xf32>
    %136 = vector.shape_cast %135 : vector<8xf32> to vector<8x1xf32>
    %c0_34 = arith.constant 0 : index
    %c0_35 = arith.constant 0 : index
    %c0_36 = arith.constant 0 : index
    %c0_37 = arith.constant 0 : index
    %c0_38 = arith.constant 0 : index
    %137 = vector.load %arg7[%c0_34, %c0_35, %c0_36, %c0_37, %c0_38] : memref<1x2x1x8x1xf32, #tpu.memory_space<vmem>>, vector<1x1x1x8x1xf32>
    %138 = vector.shape_cast %137 : vector<1x1x1x8x1xf32> to vector<8x1xf32>
    %139 = vector.shape_cast %136 : vector<8x1xf32> to vector<1x1x1x8x1xf32>
    tpu.vector_store %arg7[%c0_34, %c0_35, %c0_36, %c0_37, %c0_38], %139 {strides = array<i32>} : memref<1x2x1x8x1xf32, #tpu.memory_space<vmem>>, vector<1x1x1x8x1xf32>,
    %c2_i32_39 = arith.constant 2 : i32
    %140 = arith.muli %arg0, %c2_i32_39 : i32
    %c1_i32_40 = arith.constant 1 : i32
    %141 = arith.addi %140, %c1_i32_40 : i32
    %c16_i32_41 = arith.constant 16 : i32
    %142 = arith.muli %141, %c16_i32_41 : i32
    %c0_i32_42 = arith.constant 0 : i32
    %143 = arith.addi %142, %c0_i32_42 : i32
    %144 = arith.index_cast %143 : i32 to index
    %145 = memref.load %arg2[%144] : memref<64xf32, #tpu.memory_space<smem>>
    %c1_i32_43 = arith.constant 1 : i32
    %146 = arith.addi %142, %c1_i32_43 : i32
    %147 = arith.index_cast %146 : i32 to index
    %148 = memref.load %arg2[%147] : memref<64xf32, #tpu.memory_space<smem>>
    %c2_i32_44 = arith.constant 2 : i32
    %149 = arith.addi %142, %c2_i32_44 : i32
    %150 = arith.index_cast %149 : i32 to index
    %151 = memref.load %arg2[%150] : memref<64xf32, #tpu.memory_space<smem>>
    %c3_i32_45 = arith.constant 3 : i32
    %152 = arith.addi %142, %c3_i32_45 : i32
    %153 = arith.index_cast %152 : i32 to index
    %154 = memref.load %arg2[%153] : memref<64xf32, #tpu.memory_space<smem>>
    %c4_i32_46 = arith.constant 4 : i32
    %155 = arith.addi %142, %c4_i32_46 : i32
    %156 = arith.index_cast %155 : i32 to index
    %157 = memref.load %arg2[%156] : memref<64xf32, #tpu.memory_space<smem>>
    %c5_i32_47 = arith.constant 5 : i32
    %158 = arith.addi %142, %c5_i32_47 : i32
    %159 = arith.index_cast %158 : i32 to index
    %160 = memref.load %arg2[%159] : memref<64xf32, #tpu.memory_space<smem>>
    %c6_i32_48 = arith.constant 6 : i32
    %161 = arith.addi %142, %c6_i32_48 : i32
    %162 = arith.index_cast %161 : i32 to index
    %163 = memref.load %arg2[%162] : memref<64xf32, #tpu.memory_space<smem>>
    %c7_i32_49 = arith.constant 7 : i32
    %164 = arith.addi %142, %c7_i32_49 : i32
    %165 = arith.index_cast %164 : i32 to index
    %166 = memref.load %arg2[%165] : memref<64xf32, #tpu.memory_space<smem>>
    %c8_i32_50 = arith.constant 8 : i32
    %167 = arith.addi %142, %c8_i32_50 : i32
    %168 = arith.index_cast %167 : i32 to index
    %169 = memref.load %arg2[%168] : memref<64xf32, #tpu.memory_space<smem>>
    %c9_i32_51 = arith.constant 9 : i32
    %170 = arith.addi %142, %c9_i32_51 : i32
    %171 = arith.index_cast %170 : i32 to index
    %172 = memref.load %arg2[%171] : memref<64xf32, #tpu.memory_space<smem>>
    %c10_i32_52 = arith.constant 10 : i32
    %173 = arith.addi %142, %c10_i32_52 : i32
    %174 = arith.index_cast %173 : i32 to index
    %175 = memref.load %arg2[%174] : memref<64xf32, #tpu.memory_space<smem>>
    %c11_i32_53 = arith.constant 11 : i32
    %176 = arith.addi %142, %c11_i32_53 : i32
    %177 = arith.index_cast %176 : i32 to index
    %178 = memref.load %arg2[%177] : memref<64xf32, #tpu.memory_space<smem>>
    %c12_i32_54 = arith.constant 12 : i32
    %179 = arith.addi %142, %c12_i32_54 : i32
    %180 = arith.index_cast %179 : i32 to index
    %181 = memref.load %arg2[%180] : memref<64xf32, #tpu.memory_space<smem>>
    %c13_i32_55 = arith.constant 13 : i32
    %182 = arith.addi %142, %c13_i32_55 : i32
    %183 = arith.index_cast %182 : i32 to index
    %184 = memref.load %arg2[%183] : memref<64xf32, #tpu.memory_space<smem>>
    %185 = vector.broadcast %163 : f32 to vector<8x256xf32>
    %186 = arith.mulf %185, %14 : vector<8x256xf32>
    %187 = vector.broadcast %166 : f32 to vector<8x256xf32>
    %188 = arith.mulf %187, %16 : vector<8x256xf32>
    %189 = arith.addf %186, %188 : vector<8x256xf32>
    %190 = vector.broadcast %169 : f32 to vector<8x256xf32>
    %191 = arith.mulf %190, %18 : vector<8x256xf32>
    %192 = arith.addf %189, %191 : vector<8x256xf32>
    %193 = vector.broadcast %178 : f32 to vector<8x256xf32>
    %194 = arith.addf %192, %193 : vector<8x256xf32>
    %cst_56 = arith.constant 1.000000e+00 : f32
    %195 = vector.broadcast %cst_56 : f32 to vector<8x256xf32>
    %196 = arith.divf %195, %194 : vector<8x256xf32>
    %197 = vector.broadcast %145 : f32 to vector<8x256xf32>
    %198 = arith.mulf %197, %14 : vector<8x256xf32>
    %199 = vector.broadcast %148 : f32 to vector<8x256xf32>
    %200 = arith.mulf %199, %16 : vector<8x256xf32>
    %201 = arith.addf %198, %200 : vector<8x256xf32>
    %202 = vector.broadcast %151 : f32 to vector<8x256xf32>
    %203 = arith.mulf %202, %18 : vector<8x256xf32>
    %204 = arith.addf %201, %203 : vector<8x256xf32>
    %205 = vector.broadcast %172 : f32 to vector<8x256xf32>
    %206 = arith.addf %204, %205 : vector<8x256xf32>
    %207 = arith.mulf %206, %196 : vector<8x256xf32>
    %208 = vector.broadcast %154 : f32 to vector<8x256xf32>
    %209 = arith.mulf %208, %14 : vector<8x256xf32>
    %210 = vector.broadcast %157 : f32 to vector<8x256xf32>
    %211 = arith.mulf %210, %16 : vector<8x256xf32>
    %212 = arith.addf %209, %211 : vector<8x256xf32>
    %213 = vector.broadcast %160 : f32 to vector<8x256xf32>
    %214 = arith.mulf %213, %18 : vector<8x256xf32>
    %215 = arith.addf %212, %214 : vector<8x256xf32>
    %216 = vector.broadcast %175 : f32 to vector<8x256xf32>
    %217 = arith.addf %215, %216 : vector<8x256xf32>
    %218 = arith.mulf %217, %196 : vector<8x256xf32>
    %cst_57 = arith.constant 1.000000e+00 : f32
    %219 = arith.subf %181, %cst_57 : f32
    %cst_58 = arith.constant 0.000000e+00 : f32
    %220 = vector.broadcast %cst_58 : f32 to vector<8x256xf32>
    %221 = arith.maximumf %220, %207 : vector<8x256xf32>
    %222 = vector.broadcast %219 : f32 to vector<8x256xf32>
    %223 = arith.minimumf %222, %221 : vector<8x256xf32>
    %c0_59 = arith.constant 0 : index
    %c1_60 = arith.constant 1 : index
    %c0_61 = arith.constant 0 : index
    %c0_62 = arith.constant 0 : index
    %c0_63 = arith.constant 0 : index
    %224 = vector.load %arg6[%c0_59, %c1_60, %c0_61, %c0_62, %c0_63] : memref<1x2x2x8x256xf32, #tpu.memory_space<vmem>>, vector<1x1x1x8x256xf32>
    %225 = vector.shape_cast %224 : vector<1x1x1x8x256xf32> to vector<8x256xf32>
    %226 = vector.shape_cast %223 : vector<8x256xf32> to vector<1x1x1x8x256xf32>
    tpu.vector_store %arg6[%c0_59, %c1_60, %c0_61, %c0_62, %c0_63], %226 {strides = array<i32>} : memref<1x2x2x8x256xf32, #tpu.memory_space<vmem>>, vector<1x1x1x8x256xf32>,
    %cst_64 = arith.constant 1.000000e+00 : f32
    %227 = arith.subf %184, %cst_64 : f32
    %cst_65 = arith.constant 0.000000e+00 : f32
    %228 = vector.broadcast %cst_65 : f32 to vector<8x256xf32>
    %229 = arith.maximumf %228, %218 : vector<8x256xf32>
    %230 = vector.broadcast %227 : f32 to vector<8x256xf32>
    %231 = arith.minimumf %230, %229 : vector<8x256xf32>
    %c0_66 = arith.constant 0 : index
    %c1_67 = arith.constant 1 : index
    %c1_68 = arith.constant 1 : index
    %c0_69 = arith.constant 0 : index
    %c0_70 = arith.constant 0 : index
    %232 = vector.load %arg6[%c0_66, %c1_67, %c1_68, %c0_69, %c0_70] : memref<1x2x2x8x256xf32, #tpu.memory_space<vmem>>, vector<1x1x1x8x256xf32>
    %233 = vector.shape_cast %232 : vector<1x1x1x8x256xf32> to vector<8x256xf32>
    %234 = vector.shape_cast %231 : vector<8x256xf32> to vector<1x1x1x8x256xf32>
    tpu.vector_store %arg6[%c0_66, %c1_67, %c1_68, %c0_69, %c0_70], %234 {strides = array<i32>} : memref<1x2x2x8x256xf32, #tpu.memory_space<vmem>>, vector<1x1x1x8x256xf32>,
    %cst_71 = arith.constant 0.000000e+00 : f32
    %235 = vector.broadcast %cst_71 : f32 to vector<8x256xf32>
    %236 = arith.cmpf ogt, %194, %235 : vector<8x256xf32>
    %cst_72 = arith.constant 0.000000e+00 : f32
    %237 = vector.broadcast %cst_72 : f32 to vector<8x256xf32>
    %238 = arith.cmpf oge, %207, %237 : vector<8x256xf32>
    %239 = arith.andi %236, %238 : vector<8x256xi1>
    %240 = vector.broadcast %181 : f32 to vector<8x256xf32>
    %241 = arith.cmpf olt, %207, %240 : vector<8x256xf32>
    %242 = arith.andi %239, %241 : vector<8x256xi1>
    %cst_73 = arith.constant 0.000000e+00 : f32
    %243 = vector.broadcast %cst_73 : f32 to vector<8x256xf32>
    %244 = arith.cmpf oge, %218, %243 : vector<8x256xf32>
    %245 = arith.andi %242, %244 : vector<8x256xi1>
    %246 = vector.broadcast %184 : f32 to vector<8x256xf32>
    %247 = arith.cmpf olt, %218, %246 : vector<8x256xf32>
    %248 = arith.andi %245, %247 : vector<8x256xi1>
    %249 = vector.broadcast %21 : vector<1x256xi1> to vector<8x256xi1>
    %250 = arith.andi %248, %249 : vector<8x256xi1>
    %251 = arith.extui %250 : vector<8x256xi1> to vector<8x256xi32>
    %252 = arith.sitofp %251 : vector<8x256xi32> to vector<8x256xf32>
    %cst_74 = arith.constant dense<0xFF800000> : vector<8xf32>
    %253 = vector.multi_reduction <maximumf>, %252, %cst_74 [1] : vector<8x256xf32> to vector<8xf32>
    %254 = vector.shape_cast %253 : vector<8xf32> to vector<8x1xf32>
    %c0_75 = arith.constant 0 : index
    %c1_76 = arith.constant 1 : index
    %c0_77 = arith.constant 0 : index
    %c0_78 = arith.constant 0 : index
    %c0_79 = arith.constant 0 : index
    %255 = vector.load %arg7[%c0_75, %c1_76, %c0_77, %c0_78, %c0_79] : memref<1x2x1x8x1xf32, #tpu.memory_space<vmem>>, vector<1x1x1x8x1xf32>
    %256 = vector.shape_cast %255 : vector<1x1x1x8x1xf32> to vector<8x1xf32>
    %257 = vector.shape_cast %254 : vector<8x1xf32> to vector<1x1x1x8x1xf32>
    tpu.vector_store %arg7[%c0_75, %c1_76, %c0_77, %c0_78, %c0_79], %257 {strides = array<i32>} : memref<1x2x1x8x1xf32, #tpu.memory_space<vmem>>, vector<1x1x1x8x1xf32>,
    return
  }
  func.func @transform_0(%arg0: i32, %arg1: i32, %arg2: memref<64xf32, #tpu.memory_space<smem>>) -> (i32, i32, i32, i32) {
    %c0_i32 = arith.constant 0 : i32
    %c0_i32_0 = arith.constant 0 : i32
    %c0_i32_1 = arith.constant 0 : i32
    return %arg0, %c0_i32, %arg1, %c0_i32_0 : i32, i32, i32, i32
  }
  func.func @transform_1(%arg0: i32, %arg1: i32, %arg2: memref<64xf32, #tpu.memory_space<smem>>) -> (i32, i32, i32, i32) {
    %c0_i32 = arith.constant 0 : i32
    %c0_i32_0 = arith.constant 0 : i32
    %c0_i32_1 = arith.constant 0 : i32
    return %arg0, %c0_i32, %arg1, %c0_i32_0 : i32, i32, i32, i32
  }
  func.func @transform_2(%arg0: i32, %arg1: i32, %arg2: memref<64xf32, #tpu.memory_space<smem>>) -> (i32, i32, i32, i32) {
    %c0_i32 = arith.constant 0 : i32
    %c0_i32_0 = arith.constant 0 : i32
    %c0_i32_1 = arith.constant 0 : i32
    return %arg0, %c0_i32, %arg1, %c0_i32_0 : i32, i32, i32, i32
  }
  func.func @transform_3(%arg0: i32, %arg1: i32, %arg2: memref<64xf32, #tpu.memory_space<smem>>) -> (i32, i32, i32, i32, i32) {
    %c0_i32 = arith.constant 0 : i32
    %c0_i32_0 = arith.constant 0 : i32
    %c0_i32_1 = arith.constant 0 : i32
    %c0_i32_2 = arith.constant 0 : i32
    return %arg0, %c0_i32, %c0_i32_0, %arg1, %c0_i32_1 : i32, i32, i32, i32, i32
  }
  func.func @transform_4(%arg0: i32, %arg1: i32, %arg2: memref<64xf32, #tpu.memory_space<smem>>) -> (i32, i32, i32, i32, i32) {
    %c0_i32 = arith.constant 0 : i32
    %c0_i32_0 = arith.constant 0 : i32
    %c0_i32_1 = arith.constant 0 : i32
    %c0_i32_2 = arith.constant 0 : i32
    return %arg0, %c0_i32, %arg1, %c0_i32_0, %c0_i32_1 : i32, i32, i32, i32, i32
  }
  func.func @transform_5(%arg0: i32, %arg1: i32, %arg2: memref<64xf32, #tpu.memory_space<smem>>) -> (i32, i32, i32, i32) {
    %c0_i32 = arith.constant 0 : i32
    %c0_i32_0 = arith.constant 0 : i32
    %c0_i32_1 = arith.constant 0 : i32
    return %arg0, %c0_i32, %arg1, %c0_i32_0 : i32, i32, i32, i32
  }
}

</mosaic_0001>

<bundles_post_ra>
// kernel: neg.1
= control target key start
LH: loop header
LB: loop body
LE: loop exit
PB: predicated region body
PF: predicated region fallthrough
CT: control target
= control target key end

     0   :  { %s40_s0 = inlined_call_operand.vmem [shape: f32[2,2,3], index: 0, kind: input, shape index: {}]   ;;  %s41_s1 = inlined_call_operand.vmem [shape: f32[2,2,3], index: 1, kind: output, shape index: {}]  }
   0x1   :  { %v2_v0 = vld [vmem:[%s40_s0] sm:$0x3]  ;;  %v16_v1 = vld [vmem:[%s40_s0 + $0x2] sm:$0x3] }
   0x2   :  { %v5_v2 = vxor.u32 2147483648, %v2_v0  ;;  %v12_v3 = vxor.u32 2147483648, %v16_v1 }
   0x4   :  { %7 = vst [vmem:[%s41_s1] sm:$0x3] %v5_v2 }
   0x5   :  { %17 = vst [vmem:[%s41_s1 + $0x2] sm:$0x3] %v12_v3 }

// kernel: proj2img_forward.1
= control target key start
LH: loop header
LB: loop body
LE: loop exit
PB: predicated region body
PF: predicated region fallthrough
CT: control target
= control target key end

     0   :  { %s1107_s24 = smov [#allocation3]   ;;  %s1672_s0 = inlined_call_operand.vmem [shape: f32[64], index: 0, kind: input, shape index: {}]   ;;  %s1673_s1 = inlined_call_operand.vmem [shape: f32[2,3,8,256], index: 1, kind: input, shape index: {}]   ;;  %s1674_s2 = inlined_call_operand.vmem [shape: f32[2,3,8,1], index: 2, kind: input, shape index: {}]   ;;  %s1675_s3 = inlined_call_operand.vmem [shape: f32[2,3,8,1], index: 3, kind: input, shape index: {}]   ;;  %s1676_s4 = inlined_call_operand.vmem [shape: f32[2,2,2,8,256], index: 4, kind: output, shape index: {0}]   ;;  %s1677_s5 = inlined_call_operand.vmem [shape: f32[2,2,1,8,1], index: 5, kind: output, shape index: {1}]   ;;  %s1678_s6 = inlined_call_operand.vmem [shape: f32[2,3,8,256], index: 6, kind: output, shape index: {2}]  }
   0x1   :  { %1686 = sst [smem:[#allocation11_spill]] %s1673_s1  ;;  %s13_s23 = sshll.u32 %s1672_s0, 4  ;;  %s14_s23 = int_to_ptr.vmem [resolvable:$true] %s13_s23 }
   0x2   :  { %1687 = sst [smem:[#allocation12_spill]] %s1674_s2 }
   0x3   :  { %1688 = sst [smem:[#allocation13_spill]] %s1675_s3 }
   0x4   :  { %1689 = sst [smem:[#allocation14_spill]] %s1676_s4 }
   0x5   :  { %1690 = sst [smem:[#allocation15_spill]] %s1677_s5 }
   0x6   :  { %16 = dma.vmem_to_smem %s14_s23, 16, %s1107_s24, [#allocation2] }
   0x7   :  { %1093 = dma.done.wait [#allocation2], 16 }
   0x8   :  { %1094 = vsyncadd [#allocation2], 4294967280 }
   0x9   :  { %19 = sfence }
   0xa   :  { %s1148_s25 = smov 0   ;;  %s1150_s26 = smov 0  }
   0xb   :  { %s1152_s27 = smov 0  }
   0xc LB: > { %1691 = sst [smem:[#allocation5_spill]] %s1101_s26  ;;  %s37_s0 = sadd.s32 1, %s1101_s26  ;;  %s1105_s27 = sphi %s1152_s27, %s25_s27   ;;  %s1101_s26 = sphi %s1150_s26, %s1737_s26   ;;  %s1097_s25 = sphi %s1148_s25, %s1736_s25  }
   0xd   : > { %1692 = sst [smem:[#allocation6_spill]] %s1105_s27  ;;  %p995_p0 = scmp.ge.s32.totalorder %s1105_s27, 1 }
   0xe   : > { %p39_p1 = scmp.ge.s32.totalorder %s37_s0, 2  ;;  %p255_p2 = scmp.lt.s32.totalorder %s1105_s27, 3 }
  0x10   : > { %s1739_s0 = smov (%p39_p1, %s37_s0), 0  ;;  %p256_p3 = pnand %p995_p0, %p255_p2 }
  0x11   : > { %1693 = sst [smem:[#allocation7_spill]] %s1739_s0 }
  0x12   : > { %259 = sbr.rel (%p256_p3) target bundleno = 326 (0x146), region = 32 }
  0x17   : > { %p324_p4 = scmp.lt.s32.totalorder %s1097_s25, 1  ;;  %v1108_v0 = vmov 0   ;;  %s1694_s2 = sld [smem:[#allocation12_spill]]  ;;  %v435_v10 = vlaneseq }
  0x18   : > { %1059 = vset.pattern.permute.xlu1 %v1108_v0  ;;  %1058 = vset.pattern.permute.xlu0 %v1108_v0  ;;  %s1695_s3 = sld [smem:[#allocation13_spill]]  ;;  %s1180_s12 = sshll.u32 %s1097_s25, 5 }
  0x19   : > { %s1170_s28 = scalar_select %p324_p4, %s1097_s25, 1  ;;  %1060 = vset.pattern.permute.xlu2 %v1108_v0  ;;  %v436_v20 = vand.u32 127, %v435_v10 }
  0x1a   : > { %1696 = sst [smem:[#allocation8_spill]] %s1180_s12  ;;  %s1183_s13 = sadd.s32 16, %s1180_s12 }
  0x1b   : > { %s1030_s29 = smul.u32 24, %s1170_s28  ;;  %1697 = sst [smem:[#allocation9_spill]] %s1183_s13  ;;  %v1297_v35 = vadd.s32 128, %v436_v20 }
  0x1c   : > { %s456_s14 = sadd.s32 8, %s1180_s12  ;;  %s620_s15 = sadd.s32 8, %s1183_s13 }
  0x1d   : > { %s340_s8 = scalar_lea.vmem %s1694_s2, %s1030_s29  ;;  %s452_s16 = sadd.s32 6, %s1180_s12 }
  0x1e   : > { %v383_v1 = vld [vmem:[%s340_s8 + $0x10] sm:$0xff]  ;;  %v381_v2 = vld [vmem:[%s340_s8] sm:$0xff]  ;;  %s348_s11 = scalar_lea.vmem %s1695_s3, %s1030_s29  ;;  %v382_v5 = vld [vmem:[%s340_s8 + $0x8] sm:$0xff]  ;;  %s1188_s17 = sld [smem:[#allocation3 + %s456_s14]] }
  0x1f   : > { %396 = vperm.xlu1 %1059, %v383_v1   ;;  %386 = vperm.xlu0 %1058, %v381_v2   ;;  %v406_v3 = vld [vmem:[%s348_s11 + $0x8] sm:$0xff]  ;;  %v405_v4 = vld [vmem:[%s348_s11] sm:$0xff]  ;;  %v407_v6 = vld [vmem:[%s348_s11 + $0x10] sm:$0xff]  ;;  %s616_s18 = sadd.s32 6, %s1183_s13  ;;  %s1191_s19 = sld [smem:[#allocation3 + %s620_s15]] }
  0x20   : > { %415 = vperm.xlu2 %1060, %v406_v3   ;;  %s454_s20 = sadd.s32 7, %s1180_s12  ;;  %s1194_s21 = sld [smem:[#allocation3 + %s452_s16]] }
  0x21   : > { %s618_s22 = sadd.s32 7, %s1183_s13  ;;  %s1198_s24 = sld [smem:[#allocation3 + %s616_s18]] }
  0x22   : > { %s1200_s25 = sld [smem:[#allocation3 + %s454_s20]]  ;;  %s606_s29 = sadd.s32 1, %s1183_s13 }
  0x23   : > { %s1203_s30 = sld [smem:[#allocation3 + %s618_s22]]  ;;  %s608_s7 = sadd.s32 2, %s1183_s13 }
  0x24   : > { %s1207_s8 = sld [smem:[#allocation3 + %s1183_s13]]  ;;  %s610_s9 = sadd.s32 3, %s1183_s13  ;;  %v476_v16 = vstv %s1188_s17 }
  0x25   : > { %s1210_s10 = sld [smem:[#allocation3 + %s606_s29]]  ;;  %s612_s11 = sadd.s32 4, %s1183_s13  ;;  %v640_v17 = vstv %s1191_s19 }
  0x26   : > { %s1213_s14 = sld [smem:[#allocation3 + %s608_s7]]  ;;  %s614_s15 = sadd.s32 5, %s1183_s13  ;;  %v468_v18 = vstv %s1194_s21 }
  0x27   : > { %410 = vperm.xlu1 %1059, %v405_v4   ;;  %391 = vperm.xlu0 %1058, %v382_v5   ;;  %s1218_s16 = sld [smem:[#allocation3 + %s610_s9]]  ;;  %s622_s18 = sadd.s32 9, %s1183_s13  ;;  %v632_v19 = vstv %s1198_s24 }
  0x28   : > { %420 = vperm.xlu2 %1060, %v407_v6   ;;  %s1221_s20 = sld [smem:[#allocation3 + %s612_s11]]  ;;  %s624_s22 = sadd.s32 10, %s1183_s13  ;;  %v471_v27 = vstv %s1200_s25 }
  0x29   : > { %s1224_s23 = sld [smem:[#allocation3 + %s614_s15]]  ;;  %s626_s29 = sadd.s32 11, %s1183_s13  ;;  %v635_v28 = vstv %s1203_s30 }
  0x2a   : > { %s1698_s2 = smul.u32 48, %s1170_s28  ;;  %s1699_s1 = sld [smem:[#allocation11_spill]]  ;;  %v678_v31 = vstv %s1207_s8 }
  0x2b   : > { %s1234_s26 = sld [smem:[#allocation3 + %s622_s18]]  ;;  %s442_s27 = sadd.s32 1, %s1180_s12  ;;  %v681_v32 = vstv %s1210_s10 }
  0x2c   : > { %s1236_s9 = sld [smem:[#allocation3 + %s624_s22]]  ;;  %s444_s15 = sadd.s32 2, %s1180_s12  ;;  %v686_v25 = vstv %s1213_s14 }
  0x2d   : > { %s1239_s11 = sld [smem:[#allocation3 + %s626_s29]]  ;;  %s446_s4 = sadd.s32 3, %s1180_s12  ;;  %v696_v33 = vstv %s1218_s16 }
  0x2e   : > { %s1243_s5 = sld [smem:[#allocation3 + %s1180_s12]]  ;;  %s450_s3 = sadd.s32 5, %s1180_s12  ;;  %v699_v34 = vstv %s1221_s20 }
  0x2f   : > { %s1246_s13 = sld [smem:[#allocation3 + %s442_s27]]  ;;  %s462_s0 = sadd.s32 11, %s1180_s12  ;;  %v704_v26 = vstv %s1224_s23 }
  0x30   : > { %s1232_s7 = scalar_lea.vmem %s1699_s1, %s1698_s2  ;;  %s1249_s2 = sld [smem:[#allocation3 + %s444_s15]] }
  0x31   : > { %v379_v8 = vld [vmem:[%s1232_s7 + $0x20] sm:$0xff]  ;;  %v380_v9 = vld [vmem:[%s1232_s7 + $0x28] sm:$0xff]  ;;  %s1254_s18 = sld [smem:[#allocation3 + %s446_s4]]  ;;  %s448_s22 = sadd.s32 4, %s1180_s12  ;;  %v377_v29 = vld [vmem:[%s1232_s7 + $0x10] sm:$0xff]  ;;  %v691_v37 = vstv %s1234_s26 }
  0x32   : > { %s1257_s29 = sld [smem:[#allocation3 + %s450_s3]]  ;;  %s458_s27 = sadd.s32 9, %s1180_s12  ;;  %v375_v21 = vld [vmem:[%s1232_s7] sm:$0xff]  ;;  %v376_v22 = vld [vmem:[%s1232_s7 + $0x8] sm:$0xff]  ;;  %v378_v30 = vld [vmem:[%s1232_s7 + $0x18] sm:$0xff]  ;;  %v709_v41 = vstv %s1236_s9 }
  0x33   : > { %s1260_s15 = sld [smem:[#allocation3 + %s462_s0]]  ;;  %s1701_s1 = smul.u32 48, %s1170_s28  ;;  %v645_v36 = vstv %s1239_s11 }
  0x34   : > { %s1263_s4 = sld [smem:[#allocation3 + %s448_s22]]  ;;  %v514_v38 = vstv %s1243_s5  ;;  %s1024_s14 = sshll.u32 %s1170_s28, 6 }
  0x35   : > { %s1270_s12 = scalar_lea.vmem %s1678_s6, %s1701_s1  ;;  %s1275_s17 = sld [smem:[#allocation3 + %s458_s27]]  ;;  %v517_v46 = vstv %s1246_s13 }
  0x36   : > { %s1702_s1 = sld [smem:[#allocation9_spill]]  ;;  %v522_v42 = vstv %s1249_s2  ;;  %s1025_s22 = sshll.u32 %s1170_s28, 4 }
  0x37   : > { %1700 = sst [smem:[#allocation10_spill]] %s1254_s18 }
  0x38   : > { %s1703_s19 = sld [smem:[#allocation10_spill]]  ;;  %v540_v48 = vstv %s1257_s29 }
  0x39   : > { %v481_v45 = vstv %s1260_s15  ;;  %s1704_s25 = sld [smem:[#allocation8_spill]] }
  0x3a   : > { %v535_v56 = vstv %s1263_s4  ;;  %s1719_s2 = sld [smem:[#allocation14_spill]] }
  0x3b   : > { %v527_v55 = vstv %s1275_s17  ;;  %s1734_s15 = sld [smem:[#allocation15_spill]] }
  0x3c   : > { %s628_s21 = sadd.s32 12, %s1702_s1  ;;  %s630_s24 = sadd.s32 13, %s1702_s1 }
  0x3d   : > { %s1323_s30 = sld [smem:[#allocation3 + %s628_s21]] }
  0x3e   : > { %v532_v47 = vstv %s1703_s19  ;;  %s1338_s8 = sld [smem:[#allocation3 + %s630_s24]] }
  0x3f   : > { %s460_s10 = sadd.s32 10, %s1704_s25  ;;  %s464_s26 = sadd.s32 12, %s1704_s25 }
  0x40   : > { %s1357_s16 = sld [smem:[#allocation3 + %s460_s10]]  ;;  %s466_s13 = sadd.s32 13, %s1704_s25 }
  0x41   : > { %s1471_s5 = sld [smem:[#allocation3 + %s464_s26]]  ;;  %s1568_s0 = scalar_lea.vmem %s1719_s2, %s1024_s14 }
  0x42   : > { %s1496_s23 = sld [smem:[#allocation3 + %s466_s13]]  ;;  %s365_s4 = scalar_lea.vmem %s1734_s15, %s1025_s22 }
  0x44   : > { %s1016_s20 = sadd.f32 -1.0, %s1338_s8 }
  0x47   : > { %s1005_s7 = sadd.f32 -1.0, %s1471_s5 }
  0x48   : > { %s1006_s18 = sadd.f32 -1.0, %s1496_s23 }
  0x7a   : > { %v1216_v7 = vpop.permute.xlu2 %415 }
  0x82   : > { %v421_v11 = vpop.permute.xlu2 %420 }
  0x91   : > { %v397_v12 = vpop.permute.xlu1 %396  ;;  %v387_v13 = vpop.permute.xlu0 %386 }
  0x92   : > { %v403_v14 = vmul.f32 %v397_v12, %v379_v8  ;;  %v404_v15 = vmul.f32 %v397_v12, %v380_v9  ;;  %v399_v39 = vmul.f32 %v387_v13, %v375_v21  ;;  %v400_v40 = vmul.f32 %v387_v13, %v376_v22 }
  0x94   : > { %v1279_v23 = vadd.f32 %v421_v11, %v403_v14  ;;  %v1281_v24 = vadd.f32 %v421_v11, %v404_v15 }
  0x96   : > { %433 = vst [vmem:[%s1270_s12 + $0x20] sm:$0xff] %v1279_v23  ;;  %v477_v53 = vmul.f32 %v476_v16, %v1279_v23  ;;  %v478_v54 = vmul.f32 %v476_v16, %v1281_v24  ;;  %v641_v57 = vmul.f32 %v640_v17, %v1279_v23  ;;  %v642_v58 = vmul.f32 %v640_v17, %v1281_v24 }
  0x97   : > { %434 = vst [vmem:[%s1270_s12 + $0x28] sm:$0xff] %v1281_v24  ;;  %v687_v60 = vmul.f32 %v686_v25, %v1279_v23 }
  0x99   : > { %v411_v43 = vpop.permute.xlu1 %410  ;;  %v392_v44 = vpop.permute.xlu0 %391 }
  0x9a   : > { %v1309_v49 = vadd.f32 %v411_v43, %v399_v39  ;;  %v1311_v50 = vadd.f32 %v411_v43, %v400_v40  ;;  %v401_v51 = vmul.f32 %v392_v44, %v377_v29  ;;  %v402_v52 = vmul.f32 %v392_v44, %v378_v30 }
  0x9b   : > { %v688_v29 = vmul.f32 %v686_v25, %v1281_v24  ;;  %v1382_v25 = vmul.f32 %v522_v42, %v1279_v23  ;;  %v1387_v39 = vmul.f32 %v522_v42, %v1281_v24  ;;  %v1396_v43 = vmul.f32 %v540_v48, %v1279_v23 }
  0x9c   : > { %429 = vst [vmem:[%s1270_s12] sm:$0xff] %v1309_v49  ;;  %v469_v59 = vmul.f32 %v468_v18, %v1309_v49  ;;  %v470_v61 = vmul.f32 %v468_v18, %v1311_v50  ;;  %v633_v62 = vmul.f32 %v632_v19, %v1309_v49  ;;  %v1333_v63 = vadd.f32 %v1216_v7, %v401_v51 }
  0x9d   : > { %430 = vst [vmem:[%s1270_s12 + $0x8] sm:$0xff] %v1311_v50  ;;  %v1336_v0 = vadd.f32 %v1216_v7, %v402_v52  ;;  %v634_v1 = vmul.f32 %v632_v19, %v1311_v50  ;;  %v679_v2 = vmul.f32 %v678_v31, %v1309_v49  ;;  %v680_v3 = vmul.f32 %v678_v31, %v1311_v50 }
  0x9e   : > { %v697_v4 = vmul.f32 %v696_v33, %v1309_v49  ;;  %431 = vst [vmem:[%s1270_s12 + $0x10] sm:$0xff] %v1333_v63  ;;  %v472_v5 = vmul.f32 %v471_v27, %v1333_v63  ;;  %v636_v7 = vmul.f32 %v635_v28, %v1333_v63  ;;  %v682_v9 = vmul.f32 %v681_v32, %v1333_v63 }
  0x9f   : > { %v473_v6 = vmul.f32 %v471_v27, %v1336_v0  ;;  %v637_v8 = vmul.f32 %v635_v28, %v1336_v0  ;;  %432 = vst [vmem:[%s1270_s12 + $0x18] sm:$0xff] %v1336_v0  ;;  %v683_v10 = vmul.f32 %v681_v32, %v1336_v0  ;;  %v700_v11 = vmul.f32 %v699_v34, %v1333_v63  ;;  %s1013_s12 = sadd.f32 -1.0, %s1323_s30 }
  0xa0   : > { %v701_v12 = vmul.f32 %v699_v34, %v1336_v0  ;;  %v638_v15 = vadd.f32 %v636_v7, %v633_v62  ;;  %v474_v16 = vadd.f32 %v472_v5, %v469_v59  ;;  %v684_v17 = vadd.f32 %v682_v9, %v679_v2 }
  0xa1   : > { %v475_v13 = vadd.f32 %v473_v6, %v470_v61  ;;  %v639_v14 = vadd.f32 %v637_v8, %v634_v1  ;;  %v685_v18 = vadd.f32 %v683_v10, %v680_v3  ;;  %v698_v19 = vmul.f32 %v696_v33, %v1311_v50 }
  0xa2   : > { %v702_v20 = vadd.f32 %v700_v11, %v697_v4  ;;  %v643_v21 = vadd.f32 %v641_v57, %v638_v15  ;;  %v479_v27 = vadd.f32 %v477_v53, %v474_v16  ;;  %v705_v31 = vmul.f32 %v704_v26, %v1279_v23 }
  0xa3   : > { %v644_v22 = vadd.f32 %v642_v58, %v639_v14  ;;  %v480_v28 = vadd.f32 %v478_v54, %v475_v13  ;;  %v703_v30 = vadd.f32 %v701_v12, %v698_v19  ;;  %v706_v32 = vmul.f32 %v704_v26, %v1281_v24 }
  0xa4   : > { %v1372_v33 = vadd.f32 %v645_v36, %v643_v21  ;;  %v689_v26 = vadd.f32 %v687_v60, %v684_v17  ;;  %v1391_v40 = vadd.f32 %v481_v45, %v479_v27  ;;  %v690_v44 = vadd.f32 %v688_v29, %v685_v18 }
  0xa5   : > { %v1376_v34 = vadd.f32 %v645_v36, %v644_v22  ;;  %v1401_v36 = vmul.f32 %v540_v48, %v1281_v24  ;;  %v707_v42 = vadd.f32 %v705_v31, %v702_v20  ;;  %v1406_v51 = vadd.f32 %v481_v45, %v480_v28 }
  0xa6   : > { %1061 = vrcp.f32 %v1372_v33  ;;  %v659_v52 = vand.u32 2147483648, %v1372_v33  ;;  %v708_v23 = vadd.f32 %v706_v32, %v703_v30  ;;  %v545_v53 = vstv %s1357_s16 }
  0xa7   : > { %1063 = vrcp.f32 %v1376_v34  ;;  %v1411_v54 = vstv %s1013_s12  ;;  %v1413_v24 = vstv %s1016_s20  ;;  %v738_v48 = vstv %s1323_s30 }
  0xa8   : > { %v747_v57 = vstv %s1338_s8  ;;  %v657_v58 = vand.u32 2147483647, %v1372_v33  ;;  %v674_v45 = vand.u32 2147483648, %v1376_v34  ;;  %v1421_v59 = vadd.f32 %v691_v37, %v689_v26 }
  0xa9   : > { %1065 = vrcp.f32 %v1391_v40  ;;  %v672_v60 = vand.u32 2147483647, %v1376_v34  ;;  %v1427_v61 = vadd.f32 %v691_v37, %v690_v44  ;;  %v1431_v62 = vadd.f32 %v709_v41, %v707_v42 }
  0xaa   : > { %1067 = vrcp.f32 %v1406_v51  ;;  %vm653_vm0 = vweird.f32 %v1372_v33  ;;  %v1435_v1 = vor.u32 1.1754944e-38, %v659_v52  ;;  %v1439_v2 = vadd.f32 %v709_v41, %v708_v23 }
  0xab   : > { %v495_v3 = vand.u32 2147483648, %v1391_v40  ;;  %vm668_vm1 = vweird.f32 %v1376_v34  ;;  %v515_v37 = vmul.f32 %v514_v38, %v1309_v49  ;;  %v516_v5 = vmul.f32 %v514_v38, %v1311_v50 }
  0xac   : > { %v1062_v4 = vpop.eup %1061  ;;  %v518_v6 = vmul.f32 %v517_v46, %v1333_v63  ;;  %v519_v7 = vmul.f32 %v517_v46, %v1336_v0  ;;  %vm1457_vm2 = vcmp.eq.f32.partialorder %v657_v58, 8.507059e+37  ;;  %v675_v10 = vor.u32 1.1754944e-38, %v674_v45 }
  0xad   : > { %v1064_v41 = vpop.eup %1063  ;;  %v649_v8 = vmul.f32 %v1062_v4, %v1372_v33  ;;  %v493_v11 = vand.u32 2147483647, %v1391_v40  ;;  %v508_v38 = vand.u32 2147483647, %v1406_v51  ;;  %vm1464_vm3 = vcmp.eq.f32.partialorder %v672_v60, 8.507059e+37 }
  0xae   : > { %v664_v12 = vmul.f32 %v1064_v41, %v1376_v34  ;;  %v510_v46 = vand.u32 2147483648, %v1406_v51  ;;  %v520_v14 = vadd.f32 %v518_v6, %v515_v37  ;;  %v521_v15 = vadd.f32 %v519_v7, %v516_v5 }
  0xaf   : > { %v1469_v16 = vpop.eup %1065  ;;  %v650_v17 = vsub.f32 1.0, %v649_v8  ;;  %vm654_vm4 = vweird.f32 %v1062_v4  ;;  %vm489_vm5 = vweird.f32 %v1391_v40  ;;  %v1475_v18 = vor.u32 1.1754944e-38, %v495_v3 }
  0xb0   : > { %v536_v19 = vmul.f32 %v535_v56, %v1333_v63  ;;  %v1480_v20 = vpop.eup %1067  ;;  %v665_v21 = vsub.f32 1.0, %v664_v12  ;;  %vm669_vm6 = vweird.f32 %v1064_v41  ;;  %v485_v22 = vmul.f32 %v1469_v16, %v1391_v40  ;;  %vm655_vm11 = vmor %vm653_vm0, %vm654_vm4 }
  0xb1   : > { %vm504_vm7 = vweird.f32 %v1406_v51  ;;  %v533_v27 = vmul.f32 %v532_v47, %v1309_v49  ;;  %v651_v28 = vmul.f32 %v1062_v4, %v650_v17  ;;  %vm732_vm8 = vcmp.gt.f32.partialorder %v1372_v33, 0.0  ;;  %vm670_vm13 = vmor %vm668_vm1, %vm669_vm6 }
  0xb2   : > { %v500_v29 = vmul.f32 %v1480_v20, %v1406_v51  ;;  %v525_v63 = vadd.f32 %v1382_v25, %v520_v14  ;;  %v534_v30 = vmul.f32 %v532_v47, %v1311_v50  ;;  %v666_v31 = vmul.f32 %v1064_v41, %v665_v21 }
  0xb3   : > { %vm733_vm9 = vcmp.gt.f32.partialorder %v1376_v34, 0.0  ;;  %v486_v32 = vsub.f32 1.0, %v485_v22  ;;  %v526_v26 = vadd.f32 %v1387_v39, %v521_v15  ;;  %v537_v49 = vmul.f32 %v535_v56, %v1336_v0 }
  0xb4   : > { %v652_v44 = vadd.f32 %v1062_v4, %v651_v28  ;;  %vm1502_vm10 = vcmp.eq.f32.partialorder %v493_v11, 8.507059e+37  ;;  %v501_v25 = vsub.f32 1.0, %v500_v29  ;;  %v511_v52 = vor.u32 1.1754944e-38, %v510_v46 }
  0xb5   : > { %v538_v47 = vadd.f32 %v536_v19, %v533_v27  ;;  %v667_v50 = vadd.f32 %v1064_v41, %v666_v31  ;;  %v487_v39 = vmul.f32 %v1469_v16, %v486_v32  ;;  %vm490_vm12 = vweird.f32 %v1469_v16 }
  0xb6   : > { %v539_v56 = vadd.f32 %v537_v49, %v534_v30  ;;  %v656_v0 = vsel %vm655_vm11, %v1062_v4, %v652_v44  ;;  %v502_v23 = vmul.f32 %v1480_v20, %v501_v25  ;;  %vm505_vm14 = vweird.f32 %v1480_v20  ;;  %vm1542_vm1 = vmor %vm489_vm5, %vm490_vm12 }
  0xb7   : > { %vm1516_vm15 = vcmp.eq.f32.partialorder %v508_v38, 8.507059e+37  ;;  %v528_v45 = vadd.f32 %v527_v55, %v525_v63  ;;  %v661_v60 = vsel %vm1457_vm2, %v1435_v1, %v656_v0  ;;  %v671_v3 = vsel %vm670_vm13, %v1064_v41, %v667_v50  ;;  %vm1561_vm4 = vmor %vm504_vm7, %vm505_vm14 }
  0xb8   : > { %v488_v4 = vadd.f32 %v1469_v16, %v487_v39  ;;  %v529_v37 = vadd.f32 %v527_v55, %v526_v26  ;;  %vm439_vm0 = vcmp.lt.s32.totalorder %v1297_v35, 200  ;;  %v676_v5 = vsel %vm1464_vm3, %v675_v10, %v671_v3 }
  0xb9   : > { %v694_v6 = vmul.f32 %v1421_v59, %v661_v60  ;;  %v712_v7 = vmul.f32 %v1431_v62, %v661_v60  ;;  %v543_v8 = vadd.f32 %v1396_v43, %v538_v47  ;;  %v695_v1 = vmul.f32 %v1427_v61, %v676_v5 }
  0xba   : > { %v713_v41 = vmul.f32 %v1439_v2, %v676_v5  ;;  %v503_v59 = vadd.f32 %v1480_v20, %v502_v23  ;;  %v544_v62 = vadd.f32 %v1401_v36, %v539_v56  ;;  %v492_v2 = vsel %vm1542_vm1, %v1469_v16, %v488_v4 }
  0xbb   : > { %v724_v43 = vmax.f32 %v712_v7, 0.0  ;;  %vm734_vm2 = vcmp.ge.f32.partialorder %v694_v6, 0.0  ;;  %vm1550_vm3 = vcmp.lt.f32.partialorder %v694_v6, %v738_v48  ;;  %v716_v36 = vmax.f32 %v695_v1, 0.0 }
  0xbc   : > { %v725_v10 = vmax.f32 %v713_v41, 0.0  ;;  %vm735_vm5 = vcmp.ge.f32.partialorder %v695_v1, 0.0  ;;  %vm1572_vm6 = vmand %vm732_vm8, %vm734_vm2  ;;  %vm1578_vm7 = vcmp.lt.f32.partialorder %v695_v1, %v738_v48  ;;  %vm743_vm8 = vcmp.ge.f32.partialorder %v712_v7, 0.0 }
  0xbd   : > { %v727_v12 = vmin.f32 %v1413_v24, %v724_v43  ;;  %vm1586_vm11 = vmand %vm733_vm9, %vm735_vm5  ;;  %v546_v33 = vadd.f32 %v545_v53, %v543_v8  ;;  %v553_v46 = vstv %s1005_s7  ;;  %v719_v48 = vmin.f32 %v1411_v54, %v716_v36 }
  0xbe   : > { %v728_v14 = vmin.f32 %v1413_v24, %v725_v10  ;;  %vm741_vm12 = vmand %vm1572_vm6, %vm1550_vm3  ;;  %v715_v34 = vmax.f32 %v694_v6, 0.0  ;;  %v497_v15 = vsel %vm1502_vm10, %v1475_v18, %v492_v2  ;;  %v507_v24 = vsel %vm1561_vm4, %v1480_v20, %v503_v59 }
  0xbf   : > { %1017 = vst [vmem:[%s1568_s0 + $0x30] sm:$0xff] %v727_v12  ;;  %vm742_vm9 = vmand %vm1586_vm11, %vm1578_vm7  ;;  %v530_v16 = vmul.f32 %v528_v45, %v497_v15  ;;  %v547_v17 = vadd.f32 %v545_v53, %v544_v62  ;;  %v548_v19 = vmul.f32 %v546_v33, %v497_v15  ;;  %vm744_vm13 = vcmp.ge.f32.partialorder %v713_v41, 0.0 }
  0xc0   : > { %1015 = vst [vmem:[%s1568_s0 + $0x28] sm:$0xff] %v719_v48  ;;  %vm1613_vm10 = vmand %vm741_vm12, %vm743_vm8  ;;  %v718_v21 = vmin.f32 %v1411_v54, %v715_v34  ;;  %v512_v22 = vsel %vm1516_vm15, %v511_v52, %v507_v24  ;;  %v561_v20 = vstv %s1006_s18  ;;  %vm748_vm1 = vcmp.lt.f32.partialorder %v712_v7, %v747_v57 }
  0xc1   : > { %1018 = vst [vmem:[%s1568_s0 + $0x38] sm:$0xff] %v728_v14  ;;  %vm1621_vm14 = vmand %vm742_vm9, %vm744_vm13  ;;  %v531_v53 = vmul.f32 %v529_v37, %v512_v22  ;;  %v549_v28 = vmul.f32 %v547_v17, %v512_v22  ;;  %v559_v29 = vmax.f32 %v548_v19, 0.0  ;;  %vm749_vm2 = vcmp.lt.f32.partialorder %v713_v41, %v747_v57 }
  0xc2   : > { %vm750_vm3 = vmand %vm1613_vm10, %vm748_vm1  ;;  %1014 = vst [vmem:[%s1568_s0 + $0x20] sm:$0xff] %v718_v21  ;;  %vm569_vm4 = vcmp.ge.f32.partialorder %v530_v16, 0.0  ;;  %v573_v54 = vstv %s1471_s5  ;;  %v551_v63 = vmax.f32 %v530_v16, 0.0  ;;  %v1109_v30 = vmov 0.0  }
  0xc3   : > { %vm751_vm15 = vmand %vm1621_vm14, %vm749_vm2  ;;  %v1019_v31 = vsel %vm750_vm3, 1.0, %v1109_v30  ;;  %v552_v32 = vmax.f32 %v531_v53, 0.0  ;;  %v560_v26 = vmax.f32 %v549_v28, 0.0  ;;  %v562_v49 = vmin.f32 %v561_v20, %v559_v29 }
  0xc4   : > { %vm753_vm5 = vmand %vm751_vm15, %vm439_vm0  ;;  %vm567_vm6 = vcmp.gt.f32.partialorder %v1391_v40, 0.0  ;;  %vm568_vm7 = vcmp.gt.f32.partialorder %v1406_v51, 0.0  ;;  %vm570_vm11 = vcmp.ge.f32.partialorder %v531_v53, 0.0  ;;  %vm1639_vm8 = vcmp.lt.f32.partialorder %v530_v16, %v573_v54 }
  0xc5   : > { %v1020_v44 = vsel %vm753_vm5, 1.0, %v1109_v30  ;;  %v555_v42 = vmin.f32 %v553_v46, %v552_v32  ;;  %v563_v25 = vmin.f32 %v561_v20, %v560_v26  ;;  %1007 = vst [vmem:[%s1568_s0 + $0x10] sm:$0xff] %v562_v49  ;;  %vm571_vm12 = vmand %vm567_vm6, %vm569_vm4  ;;  %vm1645_vm9 = vcmp.lt.f32.partialorder %v531_v53, %v573_v54 }
  0xc6   : > { %v758_v40 = vmax.f32 %v1019_v31, %v1020_v44  ;;  %vm572_vm13 = vmand %vm568_vm7, %vm570_vm11  ;;  %v554_v51 = vmin.f32 %v553_v46, %v551_v63  ;;  %v582_v47 = vstv %s1496_s23  ;;  %vm578_vm1 = vcmp.ge.f32.partialorder %v548_v19, 0.0 }
  0xc7   : > { %557 = vst [vmem:[%s1568_s0 + $0x8] sm:$0xff] %v555_v42  ;;  %vm576_vm10 = vmand %vm571_vm12, %vm1639_vm8  ;;  %vm579_vm2 = vcmp.ge.f32.partialorder %v549_v28, 0.0  ;;  %vm583_vm15 = vcmp.lt.f32.partialorder %v548_v19, %v582_v47  ;;  %vm584_vm5 = vcmp.lt.f32.partialorder %v549_v28, %v582_v47  ;;  %vm600_vm8 = vcmask 7168  }
  0xc8   : > { %759 = vmax.xlane.f32.xlu1 %v758_v40  ;;  %1008 = vst [vmem:[%s1568_s0 + $0x18] sm:$0xff] %v563_v25  ;;  %vm577_vm14 = vmand %vm572_vm13, %vm1645_vm9 }
  0xc9   : > { %vm580_vm3 = vmand %vm576_vm10, %vm578_vm1  ;;  %556 = vst [vmem:[%s1568_s0] sm:$0xff] %v554_v51 }
  0xca   : > { %vm581_vm4 = vmand %vm577_vm14, %vm579_vm2 }
  0xcb   : > { %vm585_vm6 = vmand %vm580_vm3, %vm583_vm15 }
  0xcc   : > { %vm586_vm7 = vmand %vm581_vm4, %vm584_vm5  ;;  %v1009_v50 = vsel %vm585_vm6, 1.0, %v1109_v30 }
  0xcd   : > { %vm592_vm11 = vmand %vm586_vm7, %vm439_vm0 }
  0xce   : > { %v1010_v39 = vsel %vm592_vm11, 1.0, %v1109_v30 }
  0xcf   : > { %v597_v56 = vmax.f32 %v1009_v50, %v1010_v39 }
  0xd1   : > { %598 = vmax.xlane.f32.xlu0 %v597_v56 }
 0x13b   : > { %v760_v0 = vpop.xlane.xlu1 %759 }
 0x13c   : > { %1021 = vst.msk [vmem:[%s365_s4 + $0x8] sm:$0xff] %vm600_vm8, %v760_v0 }
 0x144   : > { %v599_v23 = vpop.xlane.xlu0 %598 }
 0x145   : > { %601 = vst.msk [vmem:[%s365_s4] sm:$0xff] %vm600_vm8, %v599_v23 }
 0x146 PF: > { %s1735_s3 = sld [smem:[#allocation6_spill]] }
 0x147   : > { %s1736_s25 = sld [smem:[#allocation5_spill]] }
 0x148   : > { %s1737_s26 = sld [smem:[#allocation7_spill]] }
 0x14c   : > { %s25_s27 = sadd.s32 1, %s1735_s3  }
 0x14d   : > { %p22_p5 = scmp.ge.s32.totalorder %s25_s27, 4  }
 0x14f   :  { %24 = sbr.rel (!%p22_p5) target bundleno = 12 (0xc), region = 96 }

</bundles_post_ra>
